<compile_context>
chip_gen: v6e
topology: v6e:2x2x1
jax: 0.10.0
libtpu: 0.0.40
codegen_flags: <defaults>
</compile_context>

<pallas_src>
import functools

import jax
import jax.numpy as jnp
import numpy as np
from jax import lax
from jax.experimental import pallas as pl
from jax.experimental.pallas import tpu as pltpu

_LANE = 128
_BN_EPS = 1e-5


def _round_up(x, m):
    return (x + m - 1) // m * m


# ----------------------------------------------------------------------------
# Fused ResConvBlock kernel (one grid step == one batch element)
# ----------------------------------------------------------------------------
def _res_conv_block_kernel(x_ref, m1_ref, b1_ref, m2_ref, b2_ref, o_ref,
                           xpad_ref, hpad_ref, *, has_proj):
    """Fused ResConvBlock on lane-dense row slabs (lane index = w*C + c).

    x_ref    (1, H, W*Cin)            input slab (f32)
    m1_ref   (3*RW1, W*Cout)          block-Toeplitz conv1 weights, BN1 scale
                                      folded in (bf16)
    b1_ref   (1, W*Cout)              BN1 shift (conv bias folded), tiled (f32)
    m2_ref   (3*RW2 [+RW1], W*Cout)   block-Toeplitz conv2 weights, BN2 scale
                                      folded in; if has_proj the block-diagonal
                                      1x1 projection is stacked below (bf16)
    b2_ref   (1, W*Cout)              BN2 shift (+ proj bias if has_proj) (f32)
    o_ref    (1, H, W*Cout)           output slab (f32)
    xpad_ref (H+2, RW1)               VMEM scratch: zero-padded input rows
    hpad_ref (H+2, RW2)               VMEM scratch: zero-padded hidden rows
    """
    H = o_ref.shape[1]
    w_co = o_ref.shape[2]            # W * Cout  (lane-dense output row width)
    w_ci = x_ref.shape[2]            # W * Cin

    x = x_ref[0]                     # (H, W*Cin) f32, lane-dense

    # ---- in-kernel halo: zero-padded input rows in VMEM (no wrapper jnp.pad).
    xpad_ref[...] = jnp.zeros_like(xpad_ref)
    xpad_ref[1:H + 1, 0:w_ci] = x

    # ---- conv1 (+BN1 folded) + ReLU: ONE matmul vs the block-Toeplitz weights.
    # LHS row h = [input row h-1 | row h | row h+1] (zero rows at the borders).
    lhs1 = jnp.concatenate(
        [xpad_ref[0:H, :], xpad_ref[1:H + 1, :], xpad_ref[2:H + 2, :]],
        axis=-1).astype(jnp.bfloat16)
    y1 = jnp.dot(lhs1, m1_ref[...], preferred_element_type=jnp.float32)
    y1 = jnp.maximum(y1 + b1_ref[...], 0.0)            # (H, W*Cout) f32

    # ---- conv2 (+BN2 folded) (+ fused 1x1 projection).  The hidden activation
    # never leaves VMEM.
    hpad_ref[...] = jnp.zeros_like(hpad_ref)
    hpad_ref[1:H + 1, 0:w_co] = y1

    pieces = [hpad_ref[0:H, :], hpad_ref[1:H + 1, :], hpad_ref[2:H + 2, :]]
    if has_proj:
        # Append the (padded) input rows: the projection matrix is stacked
        # under the conv2 weights, so the residual projection rides along in
        # the SAME matmul.
        pieces.append(xpad_ref[1:H + 1, :])
    lhs2 = jnp.concatenate(pieces, axis=-1).astype(jnp.bfloat16)
    y2 = jnp.dot(lhs2, m2_ref[...], preferred_element_type=jnp.float32)
    y2 = y2 + b2_ref[...]

    # ---- residual + final ReLU, lane-dense store.
    if not has_proj:
        y2 = y2 + x                  # Cin == Cout: same lane layout as output
    o_ref[0] = jnp.maximum(y2, 0.0).astype(o_ref.dtype)


# ----------------------------------------------------------------------------
# pallas_call wrapper
# ----------------------------------------------------------------------------
def res_conv_block_slab(x_slab, prep):
    """Apply one fused ResConvBlock to a lane-dense slab (N, H, W*Cin)."""
    N, H, w_ci = x_slab.shape
    cin, cout = prep["cin"], prep["cout"]
    W = w_ci // cin
    w_co = W * cout
    rw1 = _round_up(w_ci, _LANE)
    rw2 = _round_up(w_co, _LANE)
    has_proj = prep["has_proj"]

    kernel = functools.partial(_res_conv_block_kernel, has_proj=has_proj)

    m1_shape = tuple(prep["m1"].shape)
    m2_shape = tuple(prep["m2"].shape)

    # Weights / BN vectors use a constant index_map -> the pipeline DMAs them
    # once and re-uses the same VMEM block for every grid step.
    in_specs = [
        pl.BlockSpec((1, H, w_ci), lambda n: (n, 0, 0)),
        pl.BlockSpec(m1_shape, lambda n: (0, 0)),
        pl.BlockSpec((1, w_co), lambda n: (0, 0)),
        pl.BlockSpec(m2_shape, lambda n: (0, 0)),
        pl.BlockSpec((1, w_co), lambda n: (0, 0)),
    ]
    args = [x_slab, prep["m1"], prep["b1"], prep["m2"], prep["b2"]]

    flops = 2 * N * H * w_co * (m1_shape[0] + m2_shape[0])
    bytes_accessed = int(sum(int(a.size) * a.dtype.itemsize for a in args)
                         + N * H * w_co * 4)

    # NOTE: per-image blocks + weights total a few hundred KiB of VMEM here,
    # far below the 32 MiB scoped limit on every generation (v5e/v6e/v7x).
    # For large H / W*C this kernel would switch to a (N, H//TH) row-strip
    # grid with a TH+2-row halo fetched per step.
    return pl.pallas_call(
        kernel,
        out_shape=jax.ShapeDtypeStruct((N, H, w_co), jnp.float32),
        grid=(N,),
        in_specs=in_specs,
        out_specs=pl.BlockSpec((1, H, w_co), lambda n: (n, 0, 0)),
        scratch_shapes=[pltpu.VMEM((H + 2, rw1), jnp.float32),
                        pltpu.VMEM((H + 2, rw2), jnp.float32)],
        compiler_params=pltpu.CompilerParams(
            dimension_semantics=("parallel",),   # batch split across TCs
            vmem_limit_bytes=32 * 1024 * 1024),
        cost_estimate=pl.CostEstimate(flops=flops, transcendentals=0,
                                      bytes_accessed=bytes_accessed),
    )(*args)


def res_conv_block_forward(x_nchw, prep):
    """PyTorch-equivalent ResConvBlock.forward: NCHW f32 -> NCHW f32."""
    N, C, H, W = x_nchw.shape
    x_slab = jnp.transpose(x_nchw, (0, 2, 3, 1)).reshape(N, H, W * C)
    y_slab = res_conv_block_slab(x_slab, prep)
    return jnp.transpose(y_slab.reshape(N, H, W, prep["cout"]), (0, 3, 1, 2))


def res_conv_stack_forward(x_nchw, preps):
    """Chain blocks on the lane-dense slab layout (one NCHW<->slab transpose
    pair at the boundary, no intermediate HBM relayouts)."""
    N, C, H, W = x_nchw.shape
    s = jnp.transpose(x_nchw, (0, 2, 3, 1)).reshape(N, H, W * C)
    for prep in preps:
        s = res_conv_block_slab(s, prep)
    return jnp.transpose(s.reshape(N, H, W, preps[-1]["cout"]), (0, 3, 1, 2))


# ----------------------------------------------------------------------------
# Parameter folding / block-Toeplitz construction (host side, done once)
# ----------------------------------------------------------------------------
def _fold_bn(bias, gamma, beta, mean, var):
    scale = gamma / jnp.sqrt(var + _BN_EPS)
    shift = beta + (bias - mean) * scale
    return scale, shift


def _build_conv_matrix(w_hwio, img_w, row_width):
    """Block-Toeplitz matrix M with  out_row = [row-1 | row | row+1] @ M.

    M[kh*row_width + win*Cin + ci, wout*Cout + co] =
        w_hwio[kh, win - wout + 1, ci, co]   (zero where the tap is outside).
    """
    kh_dim, kw_dim, cin, cout = w_hwio.shape
    m = np.zeros((kh_dim * row_width, img_w * cout), np.float32)
    for kh in range(kh_dim):
        for wout in range(img_w):
            for kw in range(kw_dim):
                win = wout + kw - 1
                if 0 <= win < img_w:
                    r0 = kh * row_width + win * cin
                    c0 = wout * cout
                    m[r0:r0 + cin, c0:c0 + cout] = w_hwio[kh, kw]
    return m


def prepare_res_conv_block(raw, img_w):
    """Fold BN (+ projection) into the lane-dense kernel operands."""
    cout, cin = raw["w1"].shape[0], raw["w1"].shape[1]
    w_ci, w_co = img_w * cin, img_w * cout
    rw1 = _round_up(w_ci, _LANE)
    rw2 = _round_up(w_co, _LANE)

    w1_hwio = np.transpose(np.asarray(raw["w1"], np.float32), (2, 3, 1, 0))
    w2_hwio = np.transpose(np.asarray(raw["w2"], np.float32), (2, 3, 1, 0))
    s1, sh1 = _fold_bn(raw["b1"], raw["g1"], raw["bt1"], raw["mean1"], raw["var1"])
    s2, sh2 = _fold_bn(raw["b2"], raw["g2"], raw["bt2"], raw["mean2"], raw["var2"])
    s1, sh1 = np.asarray(s1, np.float32), np.asarray(sh1, np.float32)
    s2, sh2 = np.asarray(s2, np.float32), np.asarray(sh2, np.float32)

    def tile(v):  # per-channel vector -> tiled lane vector [w*Cout + co]
        return np.tile(np.asarray(v, np.float32), img_w)

    # Fold the BN scales directly into the bf16 weight matrices (per output
    # lane), so the kernel epilogue is just "+shift".
    m1 = _build_conv_matrix(w1_hwio, img_w, rw1) * tile(s1)[None, :]
    m2 = _build_conv_matrix(w2_hwio, img_w, rw2) * tile(s2)[None, :]

    has_proj = raw["proj_w"] is not None
    if has_proj:
        # Block-diagonal 1x1 projection stacked UNDER the conv2 weights; its
        # rows are indexed by the (padded) input-row lanes appended to lhs2.
        p_io = np.asarray(raw["proj_w"], np.float32)[:, :, 0, 0].T   # (Cin, Cout)
        mp = np.zeros((rw1, w_co), np.float32)
        for w in range(img_w):
            mp[w * cin:(w + 1) * cin, w * cout:(w + 1) * cout] = p_io
        m2 = np.concatenate([m2, mp], axis=0)
        shift2 = sh2 + np.asarray(raw["proj_b"], np.float32)
    else:
        shift2 = sh2

    return dict(
        cin=int(cin), cout=int(cout), has_proj=has_proj,
        m1=jnp.asarray(m1, jnp.bfloat16),
        b1=jnp.asarray(tile(sh1))[None, :],
        m2=jnp.asarray(m2, jnp.bfloat16),
        b2=jnp.asarray(tile(shift2))[None, :],
    )


def init_res_conv_block_params(key, cin, cout):
    """Synthetic ResConvBlock parameters (PyTorch layouts, inference-mode BN)."""
    ks = jax.random.split(key, 14)   # distinct keys for every tensor
    raw = dict(
        w1=0.1 * jax.random.normal(ks[0], (cout, cin, 3, 3), jnp.float32),
        b1=0.1 * jax.random.normal(ks[1], (cout,), jnp.float32),
        g1=1.0 + 0.1 * jax.random.normal(ks[2], (cout,), jnp.float32),
        bt1=0.1 * jax.random.normal(ks[3], (cout,), jnp.float32),
        mean1=0.1 * jax.random.normal(ks[4], (cout,), jnp.float32),
        var1=1.0 + 0.5 * jax.random.uniform(ks[5], (cout,), jnp.float32),
        w2=0.1 * jax.random.normal(ks[6], (cout, cout, 3, 3), jnp.float32),
        b2=0.1 * jax.random.normal(ks[7], (cout,), jnp.float32),
        g2=1.0 + 0.1 * jax.random.normal(ks[8], (cout,), jnp.float32),
        bt2=0.1 * jax.random.normal(ks[9], (cout,), jnp.float32),
        mean2=0.1 * jax.random.normal(ks[10], (cout,), jnp.float32),
        var2=1.0 + 0.5 * jax.random.uniform(ks[11], (cout,), jnp.float32),
    )
    if cin != cout:                  # stride is always (1,1) here
        raw["proj_w"] = 0.1 * jax.random.normal(ks[12], (cout, cin, 1, 1),
                                                jnp.float32)
        raw["proj_b"] = 0.1 * jax.random.normal(ks[13], (cout,), jnp.float32)
    else:
        raw["proj_w"] = None
        raw["proj_b"] = None
    return raw


# ----------------------------------------------------------------------------
# Pure-JAX reference (XLA convs) for correctness checking
# ----------------------------------------------------------------------------
def reference_res_conv_block(x_nchw, raw):
    dn = ("NCHW", "OIHW", "NCHW")
    s1, sh1 = _fold_bn(raw["b1"], raw["g1"], raw["bt1"], raw["mean1"], raw["var1"])
    s2, sh2 = _fold_bn(raw["b2"], raw["g2"], raw["bt2"], raw["mean2"], raw["var2"])
    if raw["proj_w"] is not None:
        identity = lax.conv_general_dilated(
            x_nchw, raw["proj_w"], (1, 1), [(0, 0), (0, 0)], dimension_numbers=dn)
        identity = identity + raw["proj_b"][None, :, None, None]
    else:
        identity = x_nchw
    h = lax.conv_general_dilated(
        x_nchw, raw["w1"], (1, 1), [(1, 1), (1, 1)], dimension_numbers=dn)
    h = jnp.maximum(h * s1[None, :, None, None] + sh1[None, :, None, None], 0.0)
    y = lax.conv_general_dilated(
        h, raw["w2"], (1, 1), [(1, 1), (1, 1)], dimension_numbers=dn)
    y = y * s2[None, :, None, None] + sh2[None, :, None, None]
    return jnp.maximum(y + identity, 0.0)


# ----------------------------------------------------------------------------
if __name__ == "__main__":
    key = jax.random.PRNGKey(0)
    k_x, k_a, k_b = jax.random.split(key, 3)

    N, Cin, Cout, H, W = 2, 4, 8, 16, 16          # W * Cout == 128 lanes
    x = jax.random.normal(k_x, (N, Cin, H, W), jnp.float32)   # NCHW like PyTorch

    raw_a = init_res_conv_block_params(k_a, Cin, Cout)    # projection skip path
    raw_b = init_res_conv_block_params(k_b, Cout, Cout)   # identity skip path
    prep_a = prepare_res_conv_block(raw_a, W)
    prep_b = prepare_res_conv_block(raw_b, W)

    # Single ResConvBlock (matches the PyTorch module).
    fwd_block = jax.jit(lambda t: res_conv_block_forward(t, prep_a))
    y = fwd_block(x)
    jax.block_until_ready(y)
    assert y.shape == (N, Cout, H, W), y.shape

    # Two blocks chained on lane-dense slabs (exercises the identity-skip path).
    fwd_stack = jax.jit(lambda t: res_conv_stack_forward(t, [prep_a, prep_b]))
    y2 = fwd_stack(x)
    jax.block_until_ready(y2)
    assert y2.shape == (N, Cout, H, W), y2.shape

    # Correctness vs pure-JAX reference (bf16 MXU operands -> loose tolerance).
    y_ref = reference_res_conv_block(x, raw_a)
    y2_ref = reference_res_conv_block(y_ref, raw_b)
    np.testing.assert_allclose(np.asarray(y), np.asarray(y_ref),
                               rtol=5e-2, atol=5e-2)
    np.testing.assert_allclose(np.asarray(y2), np.asarray(y2_ref),
                               rtol=5e-2, atol=5e-2)
    print("KERNEL_OK")
</pallas_src>

<mosaic_0001>
module attributes {stable_mosaic.version = 11 : i64} {
  func.func @_res_conv_block_kernel(%arg0: i32, %arg1: memref<1x16x64xf32, #tpu.memory_space<vmem>>, %arg2: memref<384x128xbf16, #tpu.memory_space<vmem>>, %arg3: memref<1x128xf32, #tpu.memory_space<vmem>>, %arg4: memref<512x128xbf16, #tpu.memory_space<vmem>>, %arg5: memref<1x128xf32, #tpu.memory_space<vmem>>, %arg6: memref<1x16x128xf32, #tpu.memory_space<vmem>>, %arg7: memref<18x128xf32, #tpu.memory_space<vmem>>, %arg8: memref<18x128xf32, #tpu.memory_space<vmem>>) attributes {dimension_semantics = [#tpu.dimension_semantics<parallel>], iteration_bounds = array<i64: 2>, scalar_prefetch = 0 : i64, scratch_operands = 2 : i64, tpu.core_type = #tpu.core_type<tc>, window_params = [{transform_indices = @transform_0, window_bounds = array<i64: 1, 16, 64>}, {pipeline_mode = #tpu.pipeline_mode<synchronous>, transform_indices = @transform_1, window_bounds = array<i64: 384, 128>}, {pipeline_mode = #tpu.pipeline_mode<synchronous>, transform_indices = @transform_2, window_bounds = array<i64: 1, 128>}, {pipeline_mode = #tpu.pipeline_mode<synchronous>, transform_indices = @transform_3, window_bounds = array<i64: 512, 128>}, {pipeline_mode = #tpu.pipeline_mode<synchronous>, transform_indices = @transform_4, window_bounds = array<i64: 1, 128>}, {transform_indices = @transform_5, window_bounds = array<i64: 1, 16, 128>}]} {
    %c0 = arith.constant 0 : index
    %c0_0 = arith.constant 0 : index
    %c0_1 = arith.constant 0 : index
    %0 = vector.load %arg1[%c0, %c0_0, %c0_1] : memref<1x16x64xf32, #tpu.memory_space<vmem>>, vector<1x16x64xf32>
    %1 = vector.shape_cast %0 : vector<1x16x64xf32> to vector<16x64xf32>
    %cst = arith.constant 0.000000e+00 : f32
    %2 = vector.broadcast %cst : f32 to vector<18x128xf32>
    %c0_2 = arith.constant 0 : index
    %c0_3 = arith.constant 0 : index
    %3 = vector.load %arg7[%c0_2, %c0_3] : memref<18x128xf32, #tpu.memory_space<vmem>>, vector<18x128xf32>
    tpu.vector_store %arg7[%c0_2, %c0_3], %2 {strides = array<i32>} : memref<18x128xf32, #tpu.memory_space<vmem>>, vector<18x128xf32>,
    %c1 = arith.constant 1 : index
    %c0_4 = arith.constant 0 : index
    %4 = vector.load %arg7[%c1, %c0_4] : memref<18x128xf32, #tpu.memory_space<vmem>>, vector<16x64xf32>
    tpu.vector_store %arg7[%c1, %c0_4], %1 {strides = array<i32>} : memref<18x128xf32, #tpu.memory_space<vmem>>, vector<16x64xf32>,
    %c0_5 = arith.constant 0 : index
    %c0_6 = arith.constant 0 : index
    %5 = vector.load %arg7[%c0_5, %c0_6] : memref<18x128xf32, #tpu.memory_space<vmem>>, vector<16x128xf32>
    %c1_7 = arith.constant 1 : index
    %c0_8 = arith.constant 0 : index
    %6 = vector.load %arg7[%c1_7, %c0_8] : memref<18x128xf32, #tpu.memory_space<vmem>>, vector<16x128xf32>
    %c2 = arith.constant 2 : index
    %c0_9 = arith.constant 0 : index
    %7 = vector.load %arg7[%c2, %c0_9] : memref<18x128xf32, #tpu.memory_space<vmem>>, vector<16x128xf32>
    %8 = tpu.concatenate %5, %6, %7 in 1 : vector<16x128xf32>, vector<16x128xf32>, vector<16x128xf32> -> vector<16x384xf32>
    %9 = arith.truncf %8 : vector<16x384xf32> to vector<16x384xbf16>
    %c0_10 = arith.constant 0 : index
    %c0_11 = arith.constant 0 : index
    %10 = vector.load %arg2[%c0_10, %c0_11] : memref<384x128xbf16, #tpu.memory_space<vmem>>, vector<384x128xbf16>
    %cst_12 = arith.constant dense<0.000000e+00> : vector<16x128xf32>
    %11 = tpu.matmul %9, %10, %cst_12 {dimension_numbers = #tpu.dot_dimension_numbers<[1], [0], [0], [1], [0, 0, 1, 1], [], []>} : vector<16x384xbf16>, vector<384x128xbf16>, vector<16x128xf32> -> vector<16x128xf32>
    %c0_13 = arith.constant 0 : index
    %c0_14 = arith.constant 0 : index
    %12 = vector.load %arg3[%c0_13, %c0_14] : memref<1x128xf32, #tpu.memory_space<vmem>>, vector<1x128xf32>
    %13 = vector.broadcast %12 : vector<1x128xf32> to vector<16x128xf32>
    %14 = arith.addf %11, %13 : vector<16x128xf32>
    %cst_15 = arith.constant 0.000000e+00 : f32
    %15 = vector.broadcast %cst_15 : f32 to vector<16x128xf32>
    %16 = arith.maximumf %14, %15 : vector<16x128xf32>
    %cst_16 = arith.constant 0.000000e+00 : f32
    %17 = vector.broadcast %cst_16 : f32 to vector<18x128xf32>
    %c0_17 = arith.constant 0 : index
    %c0_18 = arith.constant 0 : index
    %18 = vector.load %arg8[%c0_17, %c0_18] : memref<18x128xf32, #tpu.memory_space<vmem>>, vector<18x128xf32>
    tpu.vector_store %arg8[%c0_17, %c0_18], %17 {strides = array<i32>} : memref<18x128xf32, #tpu.memory_space<vmem>>, vector<18x128xf32>,
    %c1_19 = arith.constant 1 : index
    %c0_20 = arith.constant 0 : index
    %19 = vector.load %arg8[%c1_19, %c0_20] : memref<18x128xf32, #tpu.memory_space<vmem>>, vector<16x128xf32>
    tpu.vector_store %arg8[%c1_19, %c0_20], %16 {strides = array<i32>} : memref<18x128xf32, #tpu.memory_space<vmem>>, vector<16x128xf32>,
    %c0_21 = arith.constant 0 : index
    %c0_22 = arith.constant 0 : index
    %20 = vector.load %arg8[%c0_21, %c0_22] : memref<18x128xf32, #tpu.memory_space<vmem>>, vector<16x128xf32>
    %c1_23 = arith.constant 1 : index
    %c0_24 = arith.constant 0 : index
    %21 = vector.load %arg8[%c1_23, %c0_24] : memref<18x128xf32, #tpu.memory_space<vmem>>, vector<16x128xf32>
    %c2_25 = arith.constant 2 : index
    %c0_26 = arith.constant 0 : index
    %22 = vector.load %arg8[%c2_25, %c0_26] : memref<18x128xf32, #tpu.memory_space<vmem>>, vector<16x128xf32>
    %c1_27 = arith.constant 1 : index
    %c0_28 = arith.constant 0 : index
    %23 = vector.load %arg7[%c1_27, %c0_28] : memref<18x128xf32, #tpu.memory_space<vmem>>, vector<16x128xf32>
    %24 = tpu.concatenate %20, %21, %22, %23 in 1 : vector<16x128xf32>, vector<16x128xf32>, vector<16x128xf32>, vector<16x128xf32> -> vector<16x512xf32>
    %25 = arith.truncf %24 : vector<16x512xf32> to vector<16x512xbf16>
    %c0_29 = arith.constant 0 : index
    %c0_30 = arith.constant 0 : index
    %26 = vector.load %arg4[%c0_29, %c0_30] : memref<512x128xbf16, #tpu.memory_space<vmem>>, vector<512x128xbf16>
    %cst_31 = arith.constant dense<0.000000e+00> : vector<16x128xf32>
    %27 = tpu.matmul %25, %26, %cst_31 {dimension_numbers = #tpu.dot_dimension_numbers<[1], [0], [0], [1], [0, 0, 1, 1], [], []>} : vector<16x512xbf16>, vector<512x128xbf16>, vector<16x128xf32> -> vector<16x128xf32>
    %c0_32 = arith.constant 0 : index
    %c0_33 = arith.constant 0 : index
    %28 = vector.load %arg5[%c0_32, %c0_33] : memref<1x128xf32, #tpu.memory_space<vmem>>, vector<1x128xf32>
    %29 = vector.broadcast %28 : vector<1x128xf32> to vector<16x128xf32>
    %30 = arith.addf %27, %29 : vector<16x128xf32>
    %cst_34 = arith.constant 0.000000e+00 : f32
    %31 = vector.broadcast %cst_34 : f32 to vector<16x128xf32>
    %32 = arith.maximumf %30, %31 : vector<16x128xf32>
    %c0_35 = arith.constant 0 : index
    %c0_36 = arith.constant 0 : index
    %c0_37 = arith.constant 0 : index
    %33 = vector.load %arg6[%c0_35, %c0_36, %c0_37] : memref<1x16x128xf32, #tpu.memory_space<vmem>>, vector<1x16x128xf32>
    %34 = vector.shape_cast %33 : vector<1x16x128xf32> to vector<16x128xf32>
    %35 = vector.shape_cast %32 : vector<16x128xf32> to vector<1x16x128xf32>
    tpu.vector_store %arg6[%c0_35, %c0_36, %c0_37], %35 {strides = array<i32>} : memref<1x16x128xf32, #tpu.memory_space<vmem>>, vector<1x16x128xf32>,
    return
  }
  func.func @transform_0(%arg0: i32) -> (i32, i32, i32) {
    %c0_i32 = arith.constant 0 : i32
    %c0_i32_0 = arith.constant 0 : i32
    %c0_i32_1 = arith.constant 0 : i32
    return %arg0, %c0_i32, %c0_i32_0 : i32, i32, i32
  }
  func.func @transform_1(%arg0: i32) -> (i32, i32) {
    %c0_i32 = arith.constant 0 : i32
    %c0_i32_0 = arith.constant 0 : i32
    %c0_i32_1 = arith.constant 0 : i32
    return %c0_i32, %c0_i32_0 : i32, i32
  }
  func.func @transform_2(%arg0: i32) -> (i32, i32) {
    %c0_i32 = arith.constant 0 : i32
    %c0_i32_0 = arith.constant 0 : i32
    %c0_i32_1 = arith.constant 0 : i32
    return %c0_i32, %c0_i32_0 : i32, i32
  }
  func.func @transform_3(%arg0: i32) -> (i32, i32) {
    %c0_i32 = arith.constant 0 : i32
    %c0_i32_0 = arith.constant 0 : i32
    %c0_i32_1 = arith.constant 0 : i32
    return %c0_i32, %c0_i32_0 : i32, i32
  }
  func.func @transform_4(%arg0: i32) -> (i32, i32) {
    %c0_i32 = arith.constant 0 : i32
    %c0_i32_0 = arith.constant 0 : i32
    %c0_i32_1 = arith.constant 0 : i32
    return %c0_i32, %c0_i32_0 : i32, i32
  }
  func.func @transform_5(%arg0: i32) -> (i32, i32, i32) {
    %c0_i32 = arith.constant 0 : i32
    %c0_i32_0 = arith.constant 0 : i32
    %c0_i32_1 = arith.constant 0 : i32
    return %arg0, %c0_i32, %c0_i32_0 : i32, i32, i32
  }
}

</mosaic_0001>

<bundles_post_ra>
// kernel: _lambda_.1
= control target key start
LH: loop header
LB: loop body
LE: loop exit
PB: predicated region body
PF: predicated region fallthrough
CT: control target
= control target key end

     0   :  { %10 = vsyncpa [#allocation5], 0  ;;  %s1294_s18 = smov 0   ;;  %s1457_s0 = inlined_call_operand.vmem [shape: f32[2,16,64], index: 0, kind: input, shape index: {}]   ;;  %s1458_s1 = inlined_call_operand.hbm [shape: bf16[384,128], index: 1, kind: input, shape index: {}]   ;;  %s1459_s2 = inlined_call_operand.vmem [shape: f32[1,128], index: 2, kind: input, shape index: {}]   ;;  %s1460_s3 = inlined_call_operand.vmem [shape: bf16[512,128], index: 3, kind: input, shape index: {}]   ;;  %s1461_s4 = inlined_call_operand.vmem [shape: f32[1,128], index: 4, kind: input, shape index: {}]   ;;  %s1462_s5 = inlined_call_operand.vmem [shape: f32[2,16,128], index: 5, kind: output, shape index: {}]  }
   0x1 LB: > { %s1300_s19 = sadd.s32 4294967295, %s1257_s18   ;;  %p976_p0 = scmp.ge.s32.totalorder %s1257_s18, 1  ;;  %s1257_s18 = sphi %s1294_s18, %s16_s18  }
   0x2   : > { %p157_p1 = scmp.lt.s32.totalorder %s1257_s18, 3  ;;  %s1259_s20 = smov [#allocation4]  }
   0x3   : > { %s169_s21 = sshll.u32 %s1259_s20, 4  ;;  %p1150_p3 = scmp.eq.s32.totalorder %s1300_s19, 0  ;;  %s170_s21 = int_to_ptr.vmem [resolvable:$true] %s169_s21 }
   0x4   : > { %p1304_p2 = pnand %p976_p0, %p157_p1  ;;  %s1232_s23 = scalar_lea.vmem %s170_s21, 3072 }
   0x5   : > { %p1233_p7 = scmp.ne.s32.totalorder %s170_s21, %s1232_s23  ;;  %p1240_p10 = scmp.lt.s32.totalorder %s170_s21, %s170_s21 }
   0x6   : > { %p1146_p4 = pneg %p1304_p2  ;;  %p1241_p11 = scmp.lt.s32.totalorder %s1232_s23, %s1232_s23 }
   0x8   : > { %p1147_p5 = pnand %p1150_p3, %p1146_p4  ;;  %p1242_p12 = por %p1241_p11, %p1240_p10 }
   0xa   : > { %p1223_p6 = pneg %p1147_p5 }
   0xc   : > { %p1235_p8 = pnand %p1233_p7, %p1223_p6 }
   0xe   : > { %p1236_p9 = pneg %p1235_p8 }
  0x10   : > { %p1243_p13 = pnand %p1242_p12, %p1236_p9 }
  0x12   : > { %1246 = shalt.err (!%p1243_p13)
}
  0x13   : > { %s1260_s24 = smov 64   ;;  %s1261_s25 = smov 4  }
  0x14   : > { %1149 = dma.hbm_to_vmem [thread:$0]  (!%p1147_p5), %s1458_s1, 3072, %s170_s21, [#allocation5], %s1260_s24, %s1260_s24, %s1261_s25  }
  0x15   : > { %202 = sbr.rel (%p1304_p2) target bundleno = 487 (0x1e7), region = 40 }
  0x1a   : > { %1252 = dma.done.wait (%p1150_p3), [#allocation5], 3072  }
  0x1b   : > { %1254 = vsyncadd (%p1150_p3), [#allocation5], 4294964224  ;;  %v1262_v0 = vmov 0.0   ;;  %vm1263_vm0 = vmmov 0   ;;  %v1165_v1 = vld [vmem:[#allocation4 + $0x78] sm:$0xff]   ;;  %v1168_v4 = vld [vmem:[#allocation4 + $0x70] sm:$0xff]  }
  0x1c   : > { %1122 = vmatprep.subr.bf16.mxu1 %v1262_v0  ;;  %243 = vst [vmem:[#allocation2] sm:$0xff] %v1262_v0  ;;  %244 = vst [vmem:[#allocation2 + $0x8] sm:$0xff] %v1262_v0  ;;  %1138 = vmatprep.mubr.msk.bf16.mxu1 %vm1263_vm0, %v1262_v0  ;;  %v1166_v2 = vld [vmem:[#allocation4 + $0x38] sm:$0xff]   ;;  %v1169_v5 = vld [vmem:[#allocation4 + $0x30] sm:$0xff]   ;;  %p230_p0 = scmp.lt.s32.totalorder %s1300_s19, 1  ;;  %vm246_vm1 = vcmask 523264  }
  0x1d   : > { %245 = vst [vmem:[#allocation2 + $0x10] sm:$0x3] %v1262_v0  ;;  %541 = vst [vmem:[#allocation3] sm:$0xff] %v1262_v0  ;;  %1047 = vmatprep.subr.bf16.mxu0 %v1165_v1  ;;  %v1167_v3 = vld [vmem:[#allocation4 + $0xb8] sm:$0xff]   ;;  %v1170_v6 = vld [vmem:[#allocation4 + $0xb0] sm:$0xff]  }
  0x1e   : > { %542 = vst [vmem:[#allocation3 + $0x8] sm:$0xff] %v1262_v0  ;;  %543 = vst [vmem:[#allocation3 + $0x10] sm:$0x3] %v1262_v0  ;;  %1048 = vmatpush3.bf16.msra.mxu0 %v1166_v2  ;;  %1123 = vmatpush3.bf16.msra.mxu1 %v1167_v3  ;;  %v1171_v7 = vld [vmem:[#allocation4 + $0x68] sm:$0xff]   ;;  %v1174_v10 = vld [vmem:[#allocation4 + $0x60] sm:$0xff]   ;;  %s1465_s19 = smov (!%p230_p0, %s1300_s19), 1 }
  0x1f   : > { %1049 = vmatprep.subr.bf16.mxu0 %v1168_v4  ;;  %1124 = vmatprep.subr.bf16.mxu1 %v1262_v0  ;;  %v1172_v8 = vld [vmem:[#allocation4 + $0x28] sm:$0xff]   ;;  %v1175_v11 = vld [vmem:[#allocation4 + $0x20] sm:$0xff]   ;;  %v1177_v13 = vld [vmem:[#allocation4 + $0x58] sm:$0xff]   ;;  %s1045_s28 = sshll.u32 %s1465_s19, 4 }
  0x20   : > { %v1173_v9 = vld [vmem:[#allocation4 + $0xa8] sm:$0xff]   ;;  %v1176_v12 = vld [vmem:[#allocation4 + $0xa0] sm:$0xff]   ;;  %v1178_v14 = vld [vmem:[#allocation4 + $0x18] sm:$0xff]   ;;  %s234_s6 = scalar_lea.vmem %s1457_s0, %s1045_s28  ;;  %s239_s11 = scalar_lea.vmem %s1462_s5, %s1045_s28 }
  0x21   : > { %v1179_v15 = vld [vmem:[#allocation4 + $0x98] sm:$0xff]   ;;  %v1180_v16 = vld [vmem:[#allocation4 + $0x50] sm:$0xff]   ;;  %v1183_v19 = vld [vmem:[#allocation4 + $0x48] sm:$0xff]  }
  0x22   : > { %1050 = vmatpush3.bf16.msra.mxu0 %v1169_v5  ;;  %1125 = vmatpush3.bf16.msra.mxu1 %v1170_v6  ;;  %v1181_v17 = vld [vmem:[#allocation4 + $0x10] sm:$0xff]   ;;  %v1184_v20 = vld [vmem:[#allocation4 + $0x8] sm:$0xff]   ;;  %v1186_v22 = vld [vmem:[#allocation4 + $0x40] sm:$0xff]  }
  0x23   : > { %1051 = vmatprep.subr.bf16.mxu0 %v1171_v7  ;;  %1126 = vmatprep.subr.bf16.mxu1 %v1262_v0  ;;  %v1182_v18 = vld [vmem:[#allocation4 + $0x90] sm:$0xff]   ;;  %v1185_v21 = vld [vmem:[#allocation4 + $0x88] sm:$0xff]   ;;  %v242_v24 = vld [vmem:[%s234_s6 + $0x8] sm:$0xff] }
  0x24   : > { %v241_v23 = vld [vmem:[%s234_s6] sm:$0xff]  ;;  %248 = vst.msk [vmem:[#allocation2 + $0x9] sm:$0xff] %vm246_vm1, %v242_v24  ;;  %v1187_v25 = vld [vmem:[#allocation4] sm:$0xff]   ;;  %v1190_v27 = vld [vmem:[%s1460_s3 + $0x78] sm:$0xff]  }
  0x25   : > { %247 = vst.msk [vmem:[#allocation2 + $0x1] sm:$0xff] %vm246_vm1, %v241_v23  ;;  %v1188_v26 = vld [vmem:[#allocation4 + $0x80] sm:$0xff]   ;;  %v1189_v28 = vld [vmem:[%s1460_s3 + $0xf8] sm:$0xff]   ;;  %v1197_v44 = vld [vmem:[%s1460_s3 + $0xe8] sm:$0xff]  }
  0x26   : > { %1052 = vmatpush3.bf16.msra.mxu0 %v1172_v8  ;;  %1127 = vmatpush3.bf16.msra.mxu1 %v1173_v9  ;;  %v1191_v29 = vld [vmem:[%s1460_s3 + $0xb8] sm:$0xff]   ;;  %v1193_v34 = vld [vmem:[%s1460_s3 + $0xf0] sm:$0xff]   ;;  %v1198_v45 = vld [vmem:[%s1460_s3 + $0x68] sm:$0xff]  }
  0x27   : > { %1053 = vmatprep.subr.bf16.mxu0 %v1174_v10  ;;  %1128 = vmatprep.subr.bf16.mxu1 %v1262_v0  ;;  %v1192_v30 = vld [vmem:[%s1460_s3 + $0x38] sm:$0xff]   ;;  %v1194_v41 = vld [vmem:[%s1460_s3 + $0x70] sm:$0xff]   ;;  %v1199_v46 = vld [vmem:[%s1460_s3 + $0xa8] sm:$0xff]  }
  0x28   : > { %v1195_v42 = vld [vmem:[%s1460_s3 + $0xb0] sm:$0xff]   ;;  %v1200_v47 = vld [vmem:[%s1460_s3 + $0x28] sm:$0xff]   ;;  %v1201_v48 = vld [vmem:[%s1460_s3 + $0xe0] sm:$0xff]  }
  0x29   : > { %v1196_v43 = vld [vmem:[%s1460_s3 + $0x30] sm:$0xff]   ;;  %v1202_v49 = vld [vmem:[%s1460_s3 + $0x60] sm:$0xff]   ;;  %v1205_v52 = vld [vmem:[%s1460_s3 + $0xd8] sm:$0xff]  }
  0x2a   : > { %1054 = vmatpush3.bf16.msra.mxu0 %v1175_v11  ;;  %1129 = vmatpush3.bf16.msra.mxu1 %v1176_v12  ;;  %v1203_v50 = vld [vmem:[%s1460_s3 + $0xa0] sm:$0xff]   ;;  %v1206_v53 = vld [vmem:[%s1460_s3 + $0x58] sm:$0xff]   ;;  %v1209_v56 = vld [vmem:[%s1460_s3 + $0xd0] sm:$0xff]  }
  0x2b   : > { %1055 = vmatprep.subr.bf16.mxu0 %v1177_v13  ;;  %1130 = vmatprep.subr.bf16.mxu1 %v1262_v0  ;;  %v252_v32 = vld [vmem:[#allocation2 + $0x9] sm:$0xff]  ;;  %v1204_v51 = vld [vmem:[%s1460_s3 + $0x20] sm:$0xff]   ;;  %v1207_v54 = vld [vmem:[%s1460_s3 + $0x98] sm:$0xff]  }
  0x2c   : > { %v251_v31 = vld [vmem:[#allocation2 + $0x1] sm:$0xff]  ;;  %v254_v38 = vld [vmem:[#allocation2 + $0xa] sm:$0xff]  ;;  %v1208_v55 = vld [vmem:[%s1460_s3 + $0x18] sm:$0xff]  }
  0x2d   : > { %v249_v33 = vld [vmem:[#allocation2] sm:$0xff]  ;;  %v256_v35 = vpack.c.bf16 %v252_v32, %v251_v31  ;;  %v250_v36 = vld [vmem:[#allocation2 + $0x8] sm:$0xff]  ;;  %v1210_v57 = vld [vmem:[%s1460_s3 + $0x50] sm:$0xff]  }
  0x2e   : > { %1056 = vmatpush3.bf16.msra.mxu0 %v1178_v14  ;;  %1131 = vmatpush3.bf16.msra.mxu1 %v1179_v15  ;;  %v253_v37 = vld [vmem:[#allocation2 + $0x2] sm:$0xff]  ;;  %v255_v39 = vpack.c.bf16 %v250_v36, %v249_v33  ;;  %v1211_v58 = vld [vmem:[%s1460_s3 + $0x90] sm:$0xff]   ;;  %v985_v6 = vld [vmem:[%s1459_s2] ss:$0 sm:$0xff] }
  0x2f   : > { %1057 = vmatprep.subr.bf16.mxu0 %v1180_v16  ;;  %1132 = vmatprep.subr.bf16.mxu1 %v1262_v0  ;;  %v257_v40 = vpack.c.bf16 %v254_v38, %v253_v37  ;;  %v1212_v59 = vld [vmem:[%s1460_s3 + $0x10] sm:$0xff]   ;;  %v1213_v60 = vld [vmem:[%s1460_s3 + $0xc8] sm:$0xff]   ;;  %v1218_v1 = vld [vmem:[%s1460_s3 + $0x40] sm:$0xff]  }
  0x30   : > { %489 = vmatprep.mubr.bf16.mxu0 %v256_v35  ;;  %v1214_v61 = vld [vmem:[%s1460_s3 + $0x48] sm:$0xff]   ;;  %v1219_v2 = vld [vmem:[%s1460_s3 + $0x80] sm:$0xff]  }
  0x31   : > { %v1215_v62 = vld [vmem:[%s1460_s3 + $0x88] sm:$0xff]   ;;  %v1220_v3 = vld [vmem:[%s1460_s3] sm:$0xff]  }
  0x32   : > { %1058 = vmatpush3.bf16.msra.mxu0 %v1181_v17  ;;  %1133 = vmatpush3.bf16.msra.mxu1 %v1182_v18  ;;  %v1216_v63 = vld [vmem:[%s1460_s3 + $0x8] sm:$0xff]   ;;  %v1010_v31 = vld [vmem:[%s1461_s4] ss:$0 sm:$0xff] }
  0x33   : > { %1059 = vmatprep.subr.bf16.mxu0 %v1183_v19  ;;  %1134 = vmatprep.subr.bf16.mxu1 %v1262_v0 }
  0x36   : > { %1060 = vmatpush3.bf16.msra.mxu0 %v1184_v20  ;;  %1135 = vmatpush3.bf16.msra.mxu1 %v1185_v21 }
  0x37   : > { %1061 = vmatprep.subr.bf16.mxu0 %v1186_v22  ;;  %1136 = vmatprep.subr.bf16.mxu1 %v1262_v0  ;;  %v1217_v0 = vld [vmem:[%s1460_s3 + $0xc0] sm:$0xff]  }
  0x3a   : > { %1062 = vmatpush3.bf16.msra.mxu0 %v1187_v25  ;;  %1137 = vmatpush3.bf16.msra.mxu1 %v1188_v26 }
  0x3b   : > { %1078 = vmatprep.subr.bf16.mxu0 %v1190_v27  ;;  %1100 = vmatprep.subr.bf16.mxu1 %v1189_v28 }
  0x3d   : > { %490 = vmatmul.mubr.bf16.vlgmr.msra.gmra.mxu0 %v255_v39  ;;  %1139 = vmatmul.mubr.bf16.vlgmr.msra.gmra.mxu1 %v257_v40 }
  0x3e   : > { %1101 = vmatpush3.bf16.msra.mxu1 %v1191_v29  ;;  %1079 = vmatpush3.bf16.msra.mxu0 %v1192_v30 }
  0x3f   : > { %1102 = vmatprep.subr.bf16.mxu1 %v1193_v34  ;;  %1080 = vmatprep.subr.bf16.mxu0 %v1194_v41 }
  0x40   : > { %894 = vmatprep.mubr.bf16.mxu1 %v256_v35 }
  0x42   : > { %1103 = vmatpush3.bf16.msra.mxu1 %v1195_v42  ;;  %1081 = vmatpush3.bf16.msra.mxu0 %v1196_v43 }
  0x43   : > { %1104 = vmatprep.subr.bf16.mxu1 %v1197_v44  ;;  %1082 = vmatprep.subr.bf16.mxu0 %v1198_v45 }
  0x46   : > { %1105 = vmatpush3.bf16.msra.mxu1 %v1199_v46  ;;  %1083 = vmatpush3.bf16.msra.mxu0 %v1200_v47 }
  0x47   : > { %1106 = vmatprep.subr.bf16.mxu1 %v1201_v48  ;;  %1084 = vmatprep.subr.bf16.mxu0 %v1202_v49 }
  0x4a   : > { %1107 = vmatpush3.bf16.msra.mxu1 %v1203_v50  ;;  %1085 = vmatpush3.bf16.msra.mxu0 %v1204_v51 }
  0x4b   : > { %1108 = vmatprep.subr.bf16.mxu1 %v1205_v52  ;;  %1086 = vmatprep.subr.bf16.mxu0 %v1206_v53 }
  0x4e   : > { %1109 = vmatpush3.bf16.msra.mxu1 %v1207_v54  ;;  %1087 = vmatpush3.bf16.msra.mxu0 %v1208_v55 }
  0x4f   : > { %1110 = vmatprep.subr.bf16.mxu1 %v1209_v56  ;;  %1088 = vmatprep.subr.bf16.mxu0 %v1210_v57 }
  0x52   : > { %1111 = vmatpush3.bf16.msra.mxu1 %v1211_v58  ;;  %1089 = vmatpush3.bf16.msra.mxu0 %v1212_v59 }
  0x53   : > { %1112 = vmatprep.subr.bf16.mxu1 %v1213_v60  ;;  %1090 = vmatprep.subr.bf16.mxu0 %v1214_v61 }
  0x56   : > { %1113 = vmatpush3.bf16.msra.mxu1 %v1215_v62  ;;  %1091 = vmatpush3.bf16.msra.mxu0 %v1216_v63 }
  0x57   : > { %1114 = vmatprep.subr.bf16.mxu1 %v1217_v0  ;;  %1092 = vmatprep.subr.bf16.mxu0 %v1218_v1 }
  0x5a   : > { %1115 = vmatpush3.bf16.msra.mxu1 %v1219_v2  ;;  %1093 = vmatpush3.bf16.msra.mxu0 %v1220_v3 }
  0xfd   : > { %v1063_v4 = vpop.f32.mrf.mxu0  ;;  %v532_v5 = vpop.f32.mrf.mxu1 }
  0xff   : > { %v1064_v7 = vpop.f32.mrf.mxu0  ;;  %v1140_v8 = vpop.f32.mrf.mxu1 }
 0x100   : > { %v1065_v9 = vadd.f32 %v1064_v7, %v1063_v4 }
 0x101   : > { %v1066_v10 = vpop.f32.mrf.mxu0  ;;  %v535_v11 = vpop.f32.mrf.mxu1 }
 0x102   : > { %v492_v12 = vadd.f32 %v1065_v9, %v985_v6 }
 0x103   : > { %v1067_v13 = vpop.f32.mrf.mxu0  ;;  %v1141_v14 = vpop.f32.mrf.mxu1 }
 0x104   : > { %v533_v15 = vadd.f32 %v532_v5, %v492_v12  ;;  %v1068_v16 = vadd.f32 %v1067_v13, %v1066_v10 }
 0x106   : > { %v539_v17 = vmax.f32 %v533_v15, 0.0  ;;  %v495_v18 = vadd.f32 %v1068_v16, %v985_v6 }
 0x108   : > { %544 = vst [vmem:[#allocation3 + $0x1] sm:$0xff] %v539_v17  ;;  %v536_v19 = vadd.f32 %v535_v11, %v495_v18 }
 0x10a   : > { %v540_v20 = vmax.f32 %v536_v19, 0.0 }
 0x10c   : > { %545 = vst [vmem:[#allocation3 + $0x9] sm:$0xff] %v540_v20  ;;  %v555_v21 = vpack.c.bf16 %v540_v20, %v539_v17 }
 0x10e   : > { %853 = vmatprep.mubr.bf16.mxu0 %v555_v21 }
 0x10f   : > { %v546_v22 = vld [vmem:[#allocation3] sm:$0xff] }
 0x113   : > { %v550_v23 = vld [vmem:[#allocation3 + $0x2] sm:$0xff]  ;;  %v551_v24 = vld [vmem:[#allocation3 + $0xa] sm:$0xff] }
 0x114   : > { %v547_v25 = vld [vmem:[#allocation3 + $0x8] sm:$0xff]  ;;  %v556_v26 = vpack.c.bf16 %v551_v24, %v550_v23 }
 0x115   : > { %v554_v27 = vpack.c.bf16 %v547_v25, %v546_v22 }
 0x116   : > { %895 = vmatmul.mubr.bf16.vlgmr.msra.gmra.mxu1 %v556_v26 }
 0x117   : > { %854 = vmatmul.mubr.bf16.vlgmr.msra.gmra.mxu0 %v554_v27 }
 0x1d6   : > { %v1116_v28 = vpop.f32.mrf.mxu1 }
 0x1d7   : > { %v1094_v29 = vpop.f32.mrf.mxu0 }
 0x1d8   : > { %v1117_v30 = vpop.f32.mrf.mxu1 }
 0x1d9   : > { %v1095_v32 = vpop.f32.mrf.mxu0  ;;  %v1118_v36 = vadd.f32 %v1117_v30, %v1116_v28 }
 0x1da   : > { %v1096_v33 = vadd.f32 %v1095_v32, %v1094_v29  ;;  %v1119_v34 = vpop.f32.mrf.mxu1 }
 0x1db   : > { %v1097_v35 = vpop.f32.mrf.mxu0 }
 0x1dc   : > { %v856_v37 = vadd.f32 %v1096_v33, %v1010_v31  ;;  %v1120_v38 = vpop.f32.mrf.mxu1 }
 0x1dd   : > { %v1098_v39 = vpop.f32.mrf.mxu0  ;;  %v1121_v43 = vadd.f32 %v1120_v38, %v1119_v34 }
 0x1de   : > { %v897_v40 = vadd.f32 %v1118_v36, %v856_v37  ;;  %v1099_v41 = vadd.f32 %v1098_v39, %v1097_v35 }
 0x1e0   : > { %v903_v42 = vmax.f32 %v897_v40, 0.0  ;;  %v859_v44 = vadd.f32 %v1099_v41, %v1010_v31 }
 0x1e2   : > { %905 = vst [vmem:[%s239_s11] sm:$0xff] %v903_v42  ;;  %v900_v45 = vadd.f32 %v1121_v43, %v859_v44 }
 0x1e4   : > { %v904_v46 = vmax.f32 %v900_v45, 0.0 }
 0x1e6   : > { %906 = vst [vmem:[%s239_s11 + $0x8] sm:$0xff] %v904_v46 }
 0x1e7 PF: > { %s16_s18 = sadd.s32 1, %s1257_s18  }
 0x1e8   : > { %p13_p1 = scmp.ge.s32.totalorder %s16_s18, 4  }
 0x1ea   :  { %15 = sbr.rel (!%p13_p1) target bundleno = 1 (0x1), region = 75 }
 0x1ef   :  { %928 = vsyncpa [#allocation5], 1 }
 0x1f0   :  { %930 = vsyncpa [#allocation5 + $0x1], 1 }

</bundles_post_ra>
